<compile_context>
chip_gen: v7x
topology: tpu7x:2x2x1
jax: 0.10.0
libtpu: 0.0.40
codegen_flags: <defaults>
</compile_context>

<pallas_src>
import functools

import jax
import jax.numpy as jnp
from jax.experimental import pallas as pl
from jax.experimental.pallas import tpu as pltpu

LANE = 128
_TAPS = 27  # 3x3x3 stencil


def _round_up(v, m):
    return ((v + m - 1) // m) * m


@functools.lru_cache(maxsize=None)
def _roll_is_forward():
    """Resolve pltpu.roll's rotation direction once.

    Returns True when pltpu.roll follows jnp.roll semantics,
    i.e. out[i] == x[(i - shift) % n].  Probed first under the Pallas
    interpreter (no TPU compile; AOT/mock-TPU friendly), falling back to a
    tiny device kernel if the interpreter path is unavailable.
    """

    def kernel(x_ref, o_ref):
        o_ref[...] = pltpu.roll(x_ref[...], 1, 1)

    x = jnp.arange(8 * LANE, dtype=jnp.float32).reshape(8, LANE)

    def probe(interpret):
        out = pl.pallas_call(
            kernel, out_shape=jax.ShapeDtypeStruct((8, LANE), jnp.float32),
            interpret=interpret)(x)
        v = float(out[0, 1])
        if v == float(x[0, 0]):
            return True
        if v == float(x[0, 2]):
            return False
        return None

    try:
        res = probe(True)
    except Exception:           # interpreter gap -> fall back to device probe
        res = None
    if res is None:
        res = probe(False)
    if res is None:
        raise AssertionError("unexpected pltpu.roll behaviour")
    return res


def _tap_shifts(offsets, m_pad):
    fwd = _roll_is_forward()
    return tuple(((-o) % m_pad) if fwd else (o % m_pad) for o in offsets)


def _make_fused_kernel(c, m_pad, shifts):
    """Fused encoder(3x3x3)+ReLU -> decoder(3x3x3)+ReLU -> town(1x1x1)+sigmoid."""

    def kernel(x_ref, we_ref, be_ref, mask_ref, wd_ref, bd_ref, wt_ref, bt_ref,
               o_ref):
        # x_ref:    (1, 1, m_pad) f32   flattened zero-padded volume (lanes)
        # we_ref:   (c, 27)       f32   encoder weights, one lane-dense tile
        # be_ref:   (c, 1)        f32   mask_ref: (1, m_pad) f32 (interior = 1.0)
        # wd_ref:   (27, c, c)    bf16  per-tap (cout, cin) decoder matrices
        # bd_ref:   (c, 1) f32   wt_ref: (c, 1) f32   bt_ref: (1, 1) f32
        # o_ref:    (1, 1, m_pad) f32

        # --- encoder (Cin=1): 27 roll + broadcast-FMA passes on the VPU ------
        x = jnp.broadcast_to(x_ref[0], (c, m_pad))   # hoisted sublane broadcast
        acc = jnp.zeros((c, m_pad), jnp.float32)
        for k, s in enumerate(shifts):               # 27 static taps, unrolled
            xs = x if s == 0 else pltpu.roll(x, s, 1)     # lane shift on the XLU
            acc = acc + we_ref[:, k:k + 1] * xs           # broadcast FMA (VPU)
        # bias + ReLU (f32, v5e-safe); interior mask doubles as the decoder's
        # implicit zero padding -- link never leaves on-chip storage.
        link = jnp.maximum(acc + be_ref[...], 0.0) * mask_ref[...]

        # --- decoder: 27 accumulating per-tap MXU matmuls, f32 accumulation ---
        # no im2col scratch: frees the vector-store slot (v5e) and the largest
        # VMEM buffer (v7x); operands cast to bf16 right before the MXU.
        fm = jnp.zeros((c, m_pad), jnp.float32)
        for k, s in enumerate(shifts):
            xs = link if s == 0 else pltpu.roll(link, s, 1)
            fm = fm + jnp.dot(wd_ref[k], xs.astype(jnp.bfloat16),
                              preferred_element_type=jnp.float32)
        fm = jnp.maximum(fm + bd_ref[...], 0.0)      # decoder bias + ReLU (f32)

        # --- fused town conv (channel reduction) + sigmoid epilogue -----------
        t = jnp.sum(wt_ref[...] * fm, axis=0, keepdims=True) + bt_ref[...]
        # mask the padding shell / lane tail so out_flat is clean if read raw
        o_ref[0] = (jax.nn.sigmoid(t) * mask_ref[...]).astype(o_ref.dtype)

    return kernel


def _vmem_budget_bytes(c, m_pad):
    """Explicit VMEM budget: double-buffered blocks + constants + temp headroom."""
    blocks = 2 * 2 * (m_pad * 4)                             # x + out blocks
    consts = 2 * (c * _TAPS * 4 + m_pad * 4 + _TAPS * c * c * 2 + 4 * c * 4)
    temps = 16 * c * m_pad * 4                               # link/fm/rolled slabs
    est = _round_up(blocks + consts + temps, 1 << 20) + (4 << 20)
    return int(min(max(est, 8 << 20), 32 << 20))             # safe on v5e/v6e/v7x


def _fused_forward(x_flat, we, be, mask, wd, bd, wt, bt, *, c, m_pad, shifts,
                   vmem_limit_bytes):
    n = x_flat.shape[0]
    kernel = _make_fused_kernel(c, m_pad, shifts)
    return pl.pallas_call(
        kernel,
        out_shape=jax.ShapeDtypeStruct((n, 1, m_pad), jnp.float32),
        grid=(n,),
        in_specs=[
            pl.BlockSpec((1, 1, m_pad), lambda i: (i, 0, 0)),
            pl.BlockSpec(we.shape, lambda i: (0, 0)),
            pl.BlockSpec(be.shape, lambda i: (0, 0)),
            pl.BlockSpec(mask.shape, lambda i: (0, 0)),
            pl.BlockSpec(wd.shape, lambda i: (0, 0, 0)),
            pl.BlockSpec(bd.shape, lambda i: (0, 0)),
            pl.BlockSpec(wt.shape, lambda i: (0, 0)),
            pl.BlockSpec(bt.shape, lambda i: (0, 0)),
        ],
        out_specs=pl.BlockSpec((1, 1, m_pad), lambda i: (i, 0, 0)),
        compiler_params=pltpu.CompilerParams(
            dimension_semantics=("parallel",),
            vmem_limit_bytes=vmem_limit_bytes,
        ),
    )(x_flat, we, be, mask, wd, bd, wt, bt)


def init_params(key, c_mid):
    """Deterministic synthetic parameters (Kaiming-style scaling)."""
    k1, k2, k3, k4, k5, k6 = jax.random.split(key, 6)

    def conv_w(k, kd, kh, kw, cin, cout):
        fan_in = float(kd * kh * kw * cin)
        return (jax.random.normal(k, (kd, kh, kw, cin, cout), jnp.float32)
                * (1.0 / fan_in ** 0.5))

    return {
        "enc_w": conv_w(k1, 3, 3, 3, 1, c_mid),
        "enc_b": 0.1 * jax.random.normal(k4, (c_mid,), jnp.float32),
        "dec_w": conv_w(k2, 3, 3, 3, c_mid, c_mid),
        "dec_b": 0.1 * jax.random.normal(k5, (c_mid,), jnp.float32),
        "town_w": conv_w(k3, 1, 1, 1, c_mid, 1),
        "town_b": 0.1 * jax.random.normal(k6, (1,), jnp.float32),
    }


def unet_forward(x, params):
    """Mirrors UNet.forward; returns {'quad_seg': (N, 1, D, H, W)}."""
    if x.ndim == 4:
        x = x[:, None]                                   # unsqueeze channel dim
    assert x.ndim == 5 and x.shape[1] == 1               # synthetic encoder: Cin=1
    n, _, d, h, w = x.shape
    dp, hp, wp = d + 2, h + 2, w + 2                     # 1-voxel conv padding
    m_raw = dp * hp * wp
    m_pad = _round_up(m_raw, LANE)
    c = params["enc_w"].shape[-1]

    # 3x3x3 stencil offsets in the flattened (Dp, Hp, Wp) volume, lexicographic
    # (kd, kh, kw) order -- must match the weight reordering below.
    offsets = [(kd - 1) * hp * wp + (kh - 1) * wp + (kw - 1)
               for kd in range(3) for kh in range(3) for kw in range(3)]
    # circular-roll safety margins: interior reads must never wrap (tight).
    min_q, max_q = hp * wp + wp + 1, d * hp * wp + h * wp + w
    assert min_q + min(offsets) >= 0 and max_q + max(offsets) < m_raw <= m_pad
    shifts = _tap_shifts(offsets, m_pad)

    # channels-in-sublanes / flattened-padded-volume-in-lanes storage
    xp = jnp.pad(x[:, 0].astype(jnp.float32), ((0, 0), (1, 1), (1, 1), (1, 1)))
    x_flat = jnp.pad(xp.reshape(n, 1, m_raw), ((0, 0), (0, 0), (0, m_pad - m_raw)))

    # interior-voxel mask: zeroes conv outputs on the padding shell / lane tail
    # so the next layer's shifted reads see correct zero padding.
    q = jnp.arange(m_pad)
    dq, hq, wq = q // (hp * wp), (q // wp) % hp, q % wp
    interior = ((q < m_raw) & (dq >= 1) & (dq <= d) & (hq >= 1) & (hq <= h)
                & (wq >= 1) & (wq <= w))
    mask = interior.astype(jnp.float32).reshape(1, m_pad)

    # weight/bias reshapes to the kernel's 2-D / 3-D layouts
    w_enc = params["enc_w"].reshape(_TAPS, c).T.astype(jnp.float32)       # (c, 27)
    b_enc = params["enc_b"].reshape(c, 1).astype(jnp.float32)
    w_dec = jnp.transpose(params["dec_w"].reshape(_TAPS, c, c), (0, 2, 1))
    w_dec = w_dec.astype(jnp.bfloat16)                                    # (27,co,ci)
    b_dec = params["dec_b"].reshape(c, 1).astype(jnp.float32)
    w_town = params["town_w"].reshape(c, 1).astype(jnp.float32)
    b_town = params["town_b"].reshape(1, 1).astype(jnp.float32)

    out_flat = _fused_forward(
        x_flat, w_enc, b_enc, mask, w_dec, b_dec, w_town, b_town,
        c=c, m_pad=m_pad, shifts=shifts,
        vmem_limit_bytes=_vmem_budget_bytes(c, m_pad))

    # back to NCDHW and strip the padding shell
    out_p = out_flat[:, :, :m_raw].reshape(n, 1, dp, hp, wp)
    quad_seg = out_p[:, :, 1:1 + d, 1:1 + h, 1:1 + w]
    return {"quad_seg": quad_seg}


# ----------------------------- pure-JAX reference -----------------------------
def _conv3d_ref(v, w, b, pad):
    kd, kh, kw, _, co = w.shape
    vp = jnp.pad(v, ((0, 0), (pad, pad), (pad, pad), (pad, pad), (0, 0)))
    n, dp, hp, wp, _ = vp.shape
    do, ho, wo = dp - kd + 1, hp - kh + 1, wp - kw + 1
    out = jnp.zeros((n, do, ho, wo, co), jnp.float32)
    for a in range(kd):
        for b2 in range(kh):
            for c2 in range(kw):
                xs = vp[:, a:a + do, b2:b2 + ho, c2:c2 + wo, :]
                out = out + jnp.einsum("ndhwi,io->ndhwo", xs, w[a, b2, c2])
    return out + b


def unet_forward_ref(x, params):
    v = x[..., None].astype(jnp.float32)
    link = jax.nn.relu(_conv3d_ref(v, params["enc_w"], params["enc_b"], 1))
    fm = jax.nn.relu(_conv3d_ref(link, params["dec_w"], params["dec_b"], 1))
    fm = _conv3d_ref(fm, params["town_w"], params["town_b"], 0)
    return jnp.transpose(jax.nn.sigmoid(fm), (0, 4, 1, 2, 3))


if __name__ == "__main__":
    key = jax.random.PRNGKey(0)
    k_x, k_p = jax.random.split(key)

    N, D, H, W = 2, 8, 8, 8
    C_MID = 8
    x = jax.random.normal(k_x, (N, D, H, W), dtype=jnp.float32)
    params = init_params(k_p, C_MID)

    preds = unet_forward(x, params)
    seg = jax.block_until_ready(preds["quad_seg"])

    assert seg.shape == (N, 1, D, H, W), seg.shape
    assert bool(jnp.all(jnp.isfinite(seg)))
    assert bool(jnp.all((seg >= 0.0) & (seg <= 1.0)))     # sigmoid output range

    ref = unet_forward_ref(x, params)
    max_err = float(jnp.max(jnp.abs(seg - ref)))
    assert max_err < 3e-2, f"mismatch vs f32 reference (bf16 decoder matmul): {max_err}"

    print("KERNEL_OK")
</pallas_src>

<mosaic_0001>
module attributes {stable_mosaic.version = 11 : i64} {
  func.func @kernel(%arg0: memref<8x128xf32, #tpu.memory_space<vmem>>, %arg1: memref<8x128xf32, #tpu.memory_space<vmem>>) attributes {dimension_semantics = [], scalar_prefetch = 0 : i64, scratch_operands = 0 : i64, tpu.core_type = #tpu.core_type<tc>} {
    %c0 = arith.constant 0 : index
    %c0_0 = arith.constant 0 : index
    %0 = vector.load %arg0[%c0, %c0_0] : memref<8x128xf32, #tpu.memory_space<vmem>>, vector<8x128xf32>
    %c1_i32 = arith.constant 1 : i32
    %1 = tpu.dynamic_rotate %0 by %c1_i32 dim 1 : vector<8x128xf32>, i32 -> vector<8x128xf32>
    %c0_1 = arith.constant 0 : index
    %c0_2 = arith.constant 0 : index
    %2 = vector.load %arg1[%c0_1, %c0_2] : memref<8x128xf32, #tpu.memory_space<vmem>>, vector<8x128xf32>
    tpu.vector_store %arg1[%c0_1, %c0_2], %1 {strides = array<i32>} : memref<8x128xf32, #tpu.memory_space<vmem>>, vector<8x128xf32>,
    return
  }
}

</mosaic_0001>

<bundles_post_ra>
// kernel: tpu_custom_call.1
= control target key start
LH: loop header
LB: loop body
LE: loop exit
PB: predicated region body
PF: predicated region fallthrough
CT: control target
= control target key end

     0   :  { %6 = vsyncpa [#allocation3], 0  ;;  %s128_s0 = inlined_call_operand.hbm [shape: f32[8,128], index: 0, kind: input, shape index: {}]   ;;  %s129_s1 = inlined_call_operand.hbm [shape: f32[8,128], index: 1, kind: output, shape index: {}]  }
   0x1   :  { %7 = vsyncpa [#allocation4], 0  ;;  %s91_s6 = smov [#allocation2]   ;;  %s43_s10 = scalar_lea.hbm %s128_s0, 128 }
   0x2   :  { %s14_s7 = sshll.u32 %s91_s6, 4  ;;  %p44_p0 = scmp.ne.s32.totalorder %s128_s0, %s43_s10  ;;  %s15_s7 = int_to_ptr.vmem [resolvable:$true] %s14_s7 }
   0x3   :  { %p47_p1 = scmp.lt.u32.totalorder %s43_s10, %s128_s0 }
   0x5   :  { %p49_p2 = pnand %p47_p1, %p44_p0 }
   0x7   :  { %52 = shalt.err (!%p49_p2)
}
   0x8   :  { %s53_s15 = scalar_lea.vmem %s15_s7, 128  ;;  %p58_p4 = scmp.lt.s32.totalorder %s15_s7, %s15_s7 }
   0x9   :  { %p54_p3 = scmp.ne.s32.totalorder %s15_s7, %s53_s15  ;;  %p59_p5 = scmp.lt.s32.totalorder %s53_s15, %s53_s15 }
   0xb   :  { %p60_p6 = por %p59_p5, %p58_p4 }
   0xd   :  { %p61_p7 = pnand %p60_p6, %p54_p3 }
   0xf   :  { %64 = shalt.err (!%p61_p7)
}
  0x10   :  { %17 = dma.hbm_to_vmem [thread:$0]  %s128_s0, 128, %s15_s7, [#allocation3]  }
  0x11   :  { %87 = dma.done.wait [#allocation3], 128  }
  0x12   :  { %88 = vsyncadd [#allocation3], 4294967168  ;;  %v21_v0 = vld [vmem:[#allocation2] sm:$0xff]  ;;  %s92_s18 = smov 1   ;;  %s93_s19 = smov [#allocation5]  }
  0x13   :  { %22 = vrot.lane.b32.xlu0 %v21_v0, %s92_s18  ;;  %s31_s20 = sshll.u32 %s93_s19, 4  ;;  %s32_s20 = int_to_ptr.vmem [resolvable:$true] %s31_s20 }
  0x14   :  { %s65_s21 = scalar_lea.vmem %s32_s20, 128  ;;  %p70_p9 = scmp.lt.s32.totalorder %s32_s20, %s32_s20 }
  0x15   :  { %p66_p8 = scmp.ne.s32.totalorder %s32_s20, %s65_s21  ;;  %p71_p10 = scmp.lt.s32.totalorder %s65_s21, %s65_s21 }
  0x17   :  { %p72_p11 = por %p71_p10, %p70_p9 }
  0x19   :  { %p73_p12 = pnand %p72_p11, %p66_p8 }
  0x85   :  { %v23_v1 = vpop.permute.xlu0 %22 }
  0x86   :  { %24 = vst [vmem:[#allocation5] sm:$0xff] %v23_v1 }
  0x87   :  { %76 = shalt.err (!%p73_p12)
}
  0x88   :  { %s77_s0 = scalar_lea.hbm %s129_s1, 128 }
  0x89   :  { %p78_p13 = scmp.ne.s32.totalorder %s129_s1, %s77_s0  ;;  %p81_p0 = scmp.lt.u32.totalorder %s77_s0, %s129_s1 }
  0x8b   :  { %p83_p1 = pnand %p81_p0, %p78_p13 }
  0x8d   :  { %86 = shalt.err (!%p83_p1)
}
  0x8e   :  { %34 = dma.vmem_to_hbm [thread:$0]  %s32_s20, 128, %s129_s1, [#allocation4]  }
  0x8f   :  { %89 = dma.done.wait [#allocation4], 128  }
  0x90   :  { %90 = vsyncadd [#allocation4], 4294967168 }
  0x91   :  { %38 = vsyncpa [#allocation3], 1 }
  0x92   :  { %39 = vsyncpa [#allocation4], 1 }

</bundles_post_ra>
